<compile_context>
chip_gen: v7x
topology: tpu7x:2x2x1
jax: 0.10.0
libtpu: 0.0.40
codegen_flags: <defaults>
</compile_context>

<pallas_src>
import functools

import jax
import jax.numpy as jnp
import numpy as np
from jax.experimental import pallas as pl
from jax.experimental.pallas import tpu as pltpu


# ----------------------------- kernels ------------------------------------ #

def _res_dense_fused_kernel(x_ref, w_ref, b_ref, o_ref):
    """Non-identity residual.
    W is packed as [W_fc | W_res] with the residual half starting at the
    lane-aligned column n_pad = w.shape[-1] // 2.
      y   = x @ [W_fc | W_res] + [b_fc | b_res]        (bf16 MXU, f32 accumulate)
      out = relu(y[:, :out_f]) + y[:, n_pad:n_pad+out_f]  (f32 epilogue)
    """
    x = x_ref[...].astype(jnp.bfloat16)                      # (tb, in_f)
    y = jnp.dot(x, w_ref[...], preferred_element_type=jnp.float32) + b_ref[...]
    n_out = o_ref.shape[-1]                                   # out_features (static)
    n_pad = w_ref.shape[-1] // 2                              # lane-aligned split
    fc = y[:, :n_out]
    res = y[:, n_pad:n_pad + n_out]
    o_ref[...] = (jnp.maximum(fc, 0.0) + res).astype(o_ref.dtype)


def _res_dense_identity_kernel(x_ref, w_ref, b_ref, o_ref):
    """Identity residual:  out = relu(x @ W_fc + b_fc) + x   (x kept f32)."""
    x = x_ref[...]                                            # (tb, in_f) f32
    h = jnp.dot(x.astype(jnp.bfloat16), w_ref[...],
                preferred_element_type=jnp.float32) + b_ref[...]
    o_ref[...] = (jnp.maximum(h, 0.0) + x).astype(o_ref.dtype)


# ----------------------------- helpers ------------------------------------ #

def _round_up(v, m):
    return ((v + m - 1) // m) * m


@functools.lru_cache(maxsize=1)
def _vmem_capacity_bytes():
    # One-time capability query (not wrapped around a kernel execution).
    try:
        return int(pltpu.get_tpu_info().vmem_capacity_bytes)
    except Exception:
        return 64 * 1024 * 1024        # conservative: v7x per-core VMEM


# ----------------------------- parameter packing --------------------------- #

def prepare_params(params):
    """Pack / pad / bf16-cast the layer weights ONCE (not per forward call)."""
    w_fc = jnp.asarray(params["w_fc"], jnp.float32)
    b_fc = jnp.asarray(params["b_fc"], jnp.float32)
    in_f, out_f = w_fc.shape
    identity = "w_res" not in params
    if identity:
        if in_f != out_f:
            raise ValueError("identity residual requires in_features == out_features")
        w = w_fc.astype(jnp.bfloat16)                         # (in_f, out_f)
        b = b_fc.reshape(1, out_f)                            # f32
    else:
        n_pad = _round_up(out_f, 128)                         # lane-aligned split point
        w_res = jnp.asarray(params["w_res"], jnp.float32)
        b_res = jnp.asarray(params["b_res"], jnp.float32)
        w = jnp.zeros((in_f, 2 * n_pad), jnp.float32)
        w = w.at[:, :out_f].set(w_fc).at[:, n_pad:n_pad + out_f].set(w_res)
        w = w.astype(jnp.bfloat16)
        b = jnp.zeros((1, 2 * n_pad), jnp.float32)
        b = b.at[0, :out_f].set(b_fc).at[0, n_pad:n_pad + out_f].set(b_res)
    return {"w": jax.device_put(w), "b": jax.device_put(b),
            "out_f": int(out_f), "identity": bool(identity)}


# ----------------------------- forward ------------------------------------- #

@functools.partial(jax.jit, static_argnames=("out_f", "identity", "max_batch_tile"))
def _residual_dense_forward(x, w, b, *, out_f, identity, max_batch_tile):
    B, in_f = x.shape
    assert w.shape[0] == in_f, "weight / input feature mismatch"
    ncols = w.shape[1]                                        # out_f (identity) or 2*Np

    out_dtype = x.dtype
    out_itemsize = jnp.dtype(out_dtype).itemsize

    # ---- VMEM-aware batch tile --------------------------------------------
    vmem = _vmem_capacity_bytes()
    budget = int(vmem * 0.5)
    weight_bytes = in_f * ncols * 2 + ncols * 4               # resident bf16 W + f32 b
    # Per-row VMEM: double-buffered f32 x-in and out, f32 matmul intermediate,
    # f32 epilogue temps, bf16 cast of x.
    per_row = (2 * in_f * 4 + 2 * out_f * out_itemsize
               + ncols * 4 + 2 * out_f * 4 + in_f * 2)
    avail = max(budget - 2 * weight_bytes, 0)                 # W / b double-buffered
    tb = min(max_batch_tile, max(avail // per_row, 8))
    tb = max((tb // 8) * 8, 8)
    # Keep >= 2 grid steps when the batch allows it: enables DMA/compute overlap
    # and lets v7x shard the parallel batch axis across both TensorCores.
    if B > 8:
        tb = min(tb, _round_up(pl.cdiv(B, 2), 8))
    tb = min(tb, _round_up(B, 8))
    grid = (pl.cdiv(B, tb),)                                  # partial last block masked

    kernel = _res_dense_identity_kernel if identity else _res_dense_fused_kernel

    flops = 2 * B * in_f * ncols
    bytes_accessed = (B * in_f * x.dtype.itemsize             # x
                      + in_f * ncols * 2 + ncols * 4          # weights + bias
                      + B * out_f * out_itemsize)             # output
    cost = pl.CostEstimate(flops=flops, transcendentals=0,
                           bytes_accessed=bytes_accessed)

    vmem_limit = min(int(vmem * 0.9), 128 * 1024 * 1024)

    return pl.pallas_call(
        kernel,
        out_shape=jax.ShapeDtypeStruct((B, out_f), out_dtype),
        grid_spec=pltpu.PrefetchScalarGridSpec(
            num_scalar_prefetch=0,
            grid=grid,
            # x: last dim equals full extent (no K padding needed).
            in_specs=[pl.BlockSpec((tb, in_f), lambda i: (i, 0)),
                      # Weight / bias are grid-invariant (DMA'd once).
                      pl.BlockSpec((in_f, ncols), lambda i: (0, 0)),
                      pl.BlockSpec((1, ncols), lambda i: (0, 0))],
            out_specs=pl.BlockSpec((tb, out_f), lambda i: (i, 0))),
        compiler_params=pltpu.CompilerParams(
            dimension_semantics=("parallel",),
            vmem_limit_bytes=vmem_limit),
        cost_estimate=cost,
    )(x, w, b)


def residual_dense_layer(x, packed, *, max_batch_tile=512):
    """ResidualDenseLayer forward (eval mode).  `packed` comes from prepare_params."""
    return _residual_dense_forward(
        x, packed["w"], packed["b"],
        out_f=packed["out_f"], identity=packed["identity"],
        max_batch_tile=max_batch_tile)


# -------------------------- param init / references ------------------------ #

def init_params(key, in_features, out_features):
    """PyTorch-nn.Linear-style init: U(-1/sqrt(in), 1/sqrt(in))."""
    k1, k2, k3, k4 = jax.random.split(key, 4)
    bound = 1.0 / np.sqrt(in_features)
    params = {
        "w_fc": jax.random.uniform(k1, (in_features, out_features),
                                   jnp.float32, -bound, bound),
        "b_fc": jax.random.uniform(k2, (out_features,),
                                   jnp.float32, -bound, bound),
    }
    if in_features != out_features:
        params["w_res"] = jax.random.uniform(k3, (in_features, out_features),
                                             jnp.float32, -bound, bound)
        params["b_res"] = jax.random.uniform(k4, (out_features,),
                                             jnp.float32, -bound, bound)
    return params


def reference_f32(x, params):
    h = jnp.maximum(x @ params["w_fc"] + params["b_fc"], 0.0)
    if "w_res" in params:
        return h + (x @ params["w_res"] + params["b_res"])
    return h + x


def reference_bf16(x, params):
    """Matches the kernel's arithmetic: bf16 matmul inputs, f32 accumulate/epilogue."""
    xb = x.astype(jnp.bfloat16)
    h = jnp.dot(xb, params["w_fc"].astype(jnp.bfloat16),
                preferred_element_type=jnp.float32) + params["b_fc"]
    h = jnp.maximum(h, 0.0)
    if "w_res" in params:
        r = jnp.dot(xb, params["w_res"].astype(jnp.bfloat16),
                    preferred_element_type=jnp.float32) + params["b_res"]
        return h + r
    return h + x.astype(jnp.float32)


# ------------------------------- main -------------------------------------- #

if __name__ == "__main__":
    key = jax.random.PRNGKey(0)
    kx1, kx2, kp1, kp2 = jax.random.split(key, 4)

    # Case 1: in_features != out_features -> fused (packed-weight) Linear residual.
    B, in_f, out_f = 96, 32, 64
    x = jax.random.normal(kx1, (B, in_f), jnp.float32)
    params = init_params(kp1, in_f, out_f)
    packed = prepare_params(params)
    out = residual_dense_layer(x, packed)
    jax.block_until_ready(out)
    np.testing.assert_allclose(np.asarray(out), np.asarray(reference_bf16(x, params)),
                               rtol=1e-4, atol=1e-4)
    np.testing.assert_allclose(np.asarray(out), np.asarray(reference_f32(x, params)),
                               rtol=5e-2, atol=5e-2)

    # Case 2: in_features == out_features -> Identity residual (f32 residual add).
    params_id = init_params(kp2, in_f, in_f)
    packed_id = prepare_params(params_id)
    out_id = residual_dense_layer(x, packed_id)
    jax.block_until_ready(out_id)
    np.testing.assert_allclose(np.asarray(out_id), np.asarray(reference_bf16(x, params_id)),
                               rtol=1e-4, atol=1e-4)
    np.testing.assert_allclose(np.asarray(out_id), np.asarray(reference_f32(x, params_id)),
                               rtol=5e-2, atol=5e-2)

    # Case 3: multi-step pipelined grid with a ragged (masked) last batch block.
    B3 = 300
    x3 = jax.random.normal(kx2, (B3, in_f), jnp.float32)
    out3 = residual_dense_layer(x3, packed, max_batch_tile=64)
    jax.block_until_ready(out3)
    np.testing.assert_allclose(np.asarray(out3), np.asarray(reference_bf16(x3, params)),
                               rtol=1e-4, atol=1e-4)
    np.testing.assert_allclose(np.asarray(out3), np.asarray(reference_f32(x3, params)),
                               rtol=5e-2, atol=5e-2)

    print("KERNEL_OK")
</pallas_src>

<mosaic_0001>
module attributes {stable_mosaic.version = 11 : i64} {
  func.func @_res_dense_fused_kernel(%arg0: i32, %arg1: memref<48x32xf32, #tpu.memory_space<vmem>>, %arg2: memref<32x256xbf16, #tpu.memory_space<vmem>>, %arg3: memref<1x256xf32, #tpu.memory_space<vmem>>, %arg4: memref<48x64xf32, #tpu.memory_space<vmem>>) attributes {dimension_semantics = [#tpu.dimension_semantics<parallel>], iteration_bounds = array<i64: 2>, scalar_prefetch = 0 : i64, scratch_operands = 0 : i64, tpu.core_type = #tpu.core_type<tc>, window_params = [{transform_indices = @transform_0, window_bounds = array<i64: 48, 32>}, {pipeline_mode = #tpu.pipeline_mode<synchronous>, transform_indices = @transform_1, window_bounds = array<i64: 32, 256>}, {pipeline_mode = #tpu.pipeline_mode<synchronous>, transform_indices = @transform_2, window_bounds = array<i64: 1, 256>}, {transform_indices = @transform_3, window_bounds = array<i64: 48, 64>}]} {
    %c0 = arith.constant 0 : index
    %c0_0 = arith.constant 0 : index
    %0 = vector.load %arg1[%c0, %c0_0] : memref<48x32xf32, #tpu.memory_space<vmem>>, vector<48x32xf32>
    %1 = arith.truncf %0 : vector<48x32xf32> to vector<48x32xbf16>
    %c0_1 = arith.constant 0 : index
    %c0_2 = arith.constant 0 : index
    %2 = vector.load %arg2[%c0_1, %c0_2] : memref<32x256xbf16, #tpu.memory_space<vmem>>, vector<32x256xbf16>
    %cst = arith.constant dense<0.000000e+00> : vector<48x256xf32>
    %3 = tpu.matmul %1, %2, %cst {dimension_numbers = #tpu.dot_dimension_numbers<[1], [0], [0], [1], [0, 0, 1, 1], [], []>} : vector<48x32xbf16>, vector<32x256xbf16>, vector<48x256xf32> -> vector<48x256xf32>
    %c0_3 = arith.constant 0 : index
    %c0_4 = arith.constant 0 : index
    %4 = vector.load %arg3[%c0_3, %c0_4] : memref<1x256xf32, #tpu.memory_space<vmem>>, vector<1x256xf32>
    %5 = vector.broadcast %4 : vector<1x256xf32> to vector<48x256xf32>
    %6 = arith.addf %3, %5 : vector<48x256xf32>
    %7 = vector.extract_strided_slice %6 {offsets = [0, 0], sizes = [48, 64], strides = [1, 1]} : vector<48x256xf32> to vector<48x64xf32>
    %8 = vector.extract_strided_slice %6 {offsets = [0, 128], sizes = [48, 64], strides = [1, 1]} : vector<48x256xf32> to vector<48x64xf32>
    %cst_5 = arith.constant 0.000000e+00 : f32
    %9 = vector.broadcast %cst_5 : f32 to vector<48x64xf32>
    %10 = arith.maximumf %7, %9 : vector<48x64xf32>
    %11 = arith.addf %10, %8 : vector<48x64xf32>
    %c0_6 = arith.constant 0 : index
    %c0_7 = arith.constant 0 : index
    %12 = vector.load %arg4[%c0_6, %c0_7] : memref<48x64xf32, #tpu.memory_space<vmem>>, vector<48x64xf32>
    tpu.vector_store %arg4[%c0_6, %c0_7], %11 {strides = array<i32>} : memref<48x64xf32, #tpu.memory_space<vmem>>, vector<48x64xf32>,
    return
  }
  func.func @transform_0(%arg0: i32) -> (i32, i32) {
    %c0_i32 = arith.constant 0 : i32
    %c0_i32_0 = arith.constant 0 : i32
    return %arg0, %c0_i32 : i32, i32
  }
  func.func @transform_1(%arg0: i32) -> (i32, i32) {
    %c0_i32 = arith.constant 0 : i32
    %c0_i32_0 = arith.constant 0 : i32
    %c0_i32_1 = arith.constant 0 : i32
    return %c0_i32, %c0_i32_0 : i32, i32
  }
  func.func @transform_2(%arg0: i32) -> (i32, i32) {
    %c0_i32 = arith.constant 0 : i32
    %c0_i32_0 = arith.constant 0 : i32
    %c0_i32_1 = arith.constant 0 : i32
    return %c0_i32, %c0_i32_0 : i32, i32
  }
  func.func @transform_3(%arg0: i32) -> (i32, i32) {
    %c0_i32 = arith.constant 0 : i32
    %c0_i32_0 = arith.constant 0 : i32
    return %arg0, %c0_i32 : i32, i32
  }
}

</mosaic_0001>

<bundles_post_ra>
// kernel: _residual_dense_forward.1
= control target key start
LH: loop header
LB: loop body
LE: loop exit
PB: predicated region body
PF: predicated region fallthrough
CT: control target
= control target key end

     0   :  { %s432_s12 = smov 0   ;;  %s477_s0 = inlined_call_operand.vmem [shape: f32[96,32], index: 0, kind: input, shape index: {}]   ;;  %s478_s1 = inlined_call_operand.vmem [shape: bf16[32,256], index: 1, kind: input, shape index: {}]   ;;  %s479_s2 = inlined_call_operand.vmem [shape: f32[1,256], index: 2, kind: input, shape index: {}]   ;;  %s480_s3 = inlined_call_operand.vmem [shape: f32[96,64], index: 3, kind: output, shape index: {}]  }
   0x1 LB: > { %s368_s13 = sadd.s32 4294967295, %s409_s12   ;;  %p372_p0 = scmp.ge.s32.totalorder %s409_s12, 1  ;;  %s409_s12 = sphi %s432_s12, %s13_s12  }
   0x2   : > { %p138_p1 = scmp.lt.s32.totalorder %s409_s12, 3 }
   0x4   : > { %p139_p2 = pnand %p372_p0, %p138_p1 }
   0x5   : > { %v397_v0 = vld [vmem:[%s478_s1 + $0x4] ss:$8 sps:$4 sm:$0xff] (!%p139_p2)   ;;  %s162_s16 = smul.u32 (!%p139_p2), 6, %s368_s13  ;;  %v399_v1 = vld [vmem:[%s478_s1] ss:$8 sps:$4 sm:$0xff] (!%p139_p2)   ;;  %v411_v2 = vmov (!%p139_p2), 0   ;;  %v190_v14 = vlaneseq (!%p139_p2) }
   0x6   : > { %142 = sbr.rel (%p139_p2) target bundleno = 248 (0xf8), region = 32  ;;  %272 = vmatprep.mubr.bf16.mxu1 (!%p139_p2), %v411_v2  ;;  %262 = vmatprep.mubr.bf16.mxu0 (!%p139_p2), %v411_v2  ;;  %v400_v3 = vld [vmem:[%s478_s1 + $0x14] ss:$8 sps:$4 sm:$0xff] (!%p139_p2)   ;;  %v402_v4 = vld [vmem:[%s478_s1 + $0x10] ss:$8 sps:$4 sm:$0xff] (!%p139_p2)   ;;  %vm220_vm0 = vcmask (!%p139_p2), 261120  }
   0x7   : > { %384 = vmatprep.subr.bf16.mxu1 (!%p139_p2), %v397_v0  ;;  %230 = vmatprep.subr.bf16.mxu0 (!%p139_p2), %v397_v0  ;;  %p163_p3 = scmp.lt.s32.totalorder (!%p139_p2), %s162_s16, 11  ;;  %v191_v15 = vshrl.u32 (!%p139_p2), %v190_v14, 7  ;;  %v188_v17 = vld [vmem:[%s479_s2] sm:$0x3] (!%p139_p2)  ;;  %vm305_vm1 = vcmask (!%p139_p2), 523264  }
   0x8   : > { %386 = vmatpush1.bf16.msra.mxu1 (!%p139_p2), %v399_v1  ;;  %231 = vmatpush1.bf16.msra.mxu0 (!%p139_p2), %v399_v1 }
   0x9   : > { %385 = vmatprep.subr.bf16.mxu1 (!%p139_p2), %v400_v3  ;;  %232 = vmatprep.subr.bf16.mxu0 (!%p139_p2), %v400_v3  ;;  %v192_v16 = vsub.s32 (!%p139_p2), 0, %v191_v15  ;;  %v196_v18 = vsub.s32 (!%p139_p2), 1, %v191_v15 }
   0xb   : > { %v193_v19 = vrot.slane (!%p139_p2), %v188_v17, %v192_v16  ;;  %v197_v20 = vrot.slane (!%p139_p2), %v188_v17, %v196_v18 }
   0xc   : > { %387 = vmatpush1.bf16.msra.mxu1 (!%p139_p2), %v402_v4  ;;  %233 = vmatpush1.bf16.msra.mxu0 (!%p139_p2), %v402_v4 }
   0xd   : > { %s482_s16 = smov (!%p163_p3, %s162_s16), 11 }
   0xe   : > { %s373_s23 = sshll.u32 %s482_s16, 3 }
   0xf   : > { %s166_s26 = scalar_lea.vmem %s477_s0, %s373_s23  ;;  %s172_s4 = scalar_lea.vmem %s480_s3, %s373_s23 }
  0x10   : > { %v177_v5 = vld [vmem:[%s166_s26 + $0x10] sm:$0xff]  ;;  %v178_v6 = vld [vmem:[%s166_s26 + $0x18] sm:$0xff]  ;;  %v175_v7 = vld [vmem:[%s166_s26] sm:$0xff] }
  0x11   : > { %v182_v8 = vpack.c.bf16 %v178_v6, %v177_v5  ;;  %v176_v9 = vld [vmem:[%s166_s26 + $0x8] sm:$0xff]  ;;  %v179_v11 = vld [vmem:[%s166_s26 + $0x20] sm:$0xff] }
  0x12   : > { %v181_v10 = vpack.c.bf16 %v176_v9, %v175_v7  ;;  %v180_v12 = vld [vmem:[%s166_s26 + $0x28] sm:$0xff] }
  0x13   : > { %380 = vmatmul.mubr.msk.bf16.vlgmr.msra.gmra.mrb[0].mxu1 %vm220_vm0, %v182_v8  ;;  %v183_v13 = vpack.c.bf16 %v180_v12, %v179_v11 }
  0x14   : > { %379 = vmatmul.mubr.msk.bf16.vlgmr.msra.gmra.mrb[0].mxu0 %vm220_vm0, %v181_v10  ;;  %282 = vmatprep.mubr.bf16.mxu1 %v411_v2 }
  0x1b   : > { %381 = vmatmul.mubr.msk.bf16.gmra.mrb[4].mxu1 %vm220_vm0, %v183_v13 }
  0xe6   : > { %v274_v21 = vpop.f32.mrb[0].mxu1 }
  0xe7   : > { %v275_v22 = vadd.f32 %v274_v21, %v193_v19  ;;  %v276_v23 = vpop.f32.mrb[1].mxu1  ;;  %v264_v24 = vpop.f32.mrb[0].mxu0 }
  0xe8   : > { %v277_v25 = vadd.f32 %v276_v23, %v197_v20  ;;  %v278_v26 = vpop.f32.mrb[2].mxu1  ;;  %v265_v27 = vadd.f32 %v264_v24, %v193_v19  ;;  %v266_v28 = vpop.f32.mrb[1].mxu0 }
  0xe9   : > { %v295_v29 = vmax.f32 %v275_v22, 0.0  ;;  %v279_v30 = vadd.f32 %v278_v26, %v193_v19  ;;  %v280_v31 = vpop.f32.mrb[3].mxu1  ;;  %v267_v32 = vadd.f32 %v266_v28, %v197_v20  ;;  %v268_v33 = vpop.f32.mrb[2].mxu0 }
  0xea   : > { %v281_v34 = vadd.f32 %v280_v31, %v197_v20  ;;  %v293_v35 = vmax.f32 %v265_v27, 0.0  ;;  %v269_v36 = vadd.f32 %v268_v33, %v193_v19  ;;  %v270_v37 = vpop.f32.mrb[3].mxu0 }
  0xeb   : > { %v301_v38 = vadd.f32 %v295_v29, %v277_v25  ;;  %v296_v39 = vmax.f32 %v279_v30, 0.0  ;;  %v271_v40 = vadd.f32 %v270_v37, %v197_v20 }
  0xec   : > { %v299_v41 = vadd.f32 %v293_v35, %v267_v32  ;;  %v294_v42 = vmax.f32 %v269_v36, 0.0 }
  0xed   : > { %308 = vst.msk [vmem:[%s172_s4 + $0x10] sm:$0xff] %vm305_vm1, %v301_v38  ;;  %v302_v43 = vadd.f32 %v296_v39, %v281_v34 }
  0xee   : > { %306 = vst.msk [vmem:[%s172_s4] sm:$0xff] %vm305_vm1, %v299_v41  ;;  %v300_v44 = vadd.f32 %v294_v42, %v271_v40  ;;  %v284_v45 = vpop.f32.mrb[4].mxu1 }
  0xef   : > { %309 = vst.msk [vmem:[%s172_s4 + $0x18] sm:$0xff] %vm305_vm1, %v302_v43  ;;  %v285_v46 = vadd.f32 %v284_v45, %v193_v19  ;;  %v286_v47 = vpop.f32.mrb[5].mxu1 }
  0xf0   : > { %307 = vst.msk [vmem:[%s172_s4 + $0x8] sm:$0xff] %vm305_vm1, %v300_v44  ;;  %v287_v48 = vadd.f32 %v286_v47, %v197_v20  ;;  %v288_v49 = vpop.f32.mrb[6].mxu1 }
  0xf1   : > { %v297_v50 = vmax.f32 %v285_v46, 0.0  ;;  %v289_v51 = vadd.f32 %v288_v49, %v193_v19  ;;  %v290_v52 = vpop.f32.mrb[7].mxu1 }
  0xf2   : > { %v291_v53 = vadd.f32 %v290_v52, %v197_v20 }
  0xf3   : > { %v303_v54 = vadd.f32 %v297_v50, %v287_v48  ;;  %v298_v55 = vmax.f32 %v289_v51, 0.0 }
  0xf5   : > { %310 = vst.msk [vmem:[%s172_s4 + $0x20] sm:$0xff] %vm305_vm1, %v303_v54  ;;  %v304_v56 = vadd.f32 %v298_v55, %v291_v53 }
  0xf7   : > { %311 = vst.msk [vmem:[%s172_s4 + $0x28] sm:$0xff] %vm305_vm1, %v304_v56 }
  0xf8 PF: > { %s13_s12 = sadd.s32 1, %s409_s12  }
  0xf9   : > { %p10_p4 = scmp.ge.s32.totalorder %s13_s12, 4  }
  0xfb   :  { %12 = sbr.rel (!%p10_p4) target bundleno = 1 (0x1), region = 62 }

</bundles_post_ra>
